<compile_context>
chip_gen: v5e
topology: v5e:2x2
jax: 0.10.0
libtpu: 0.0.40
codegen_flags: <defaults>
</compile_context>

<pallas_src>
import jax
import jax.numpy as jnp
from jax import lax
from jax.experimental import pallas as pl
from jax.experimental.pallas import tpu as pltpu


def _round_up(x, m):
    return ((x + m - 1) // m) * m


def _mish(x):
    # x * tanh(softplus(x)) with a numerically stable softplus.
    sp = jnp.maximum(x, 0.0) + jnp.log(1.0 + jnp.exp(-jnp.abs(x)))
    return x * jnp.tanh(sp)


# --------------------------------------------------------------------------
# Kernel 1: fused triple_fc matmul + attention_fc + mish
# --------------------------------------------------------------------------
def _fc_attn_kernel(x_ref, wt_ref, wa_ref, h_ref, a_ref):
    # h = x @ Wt : bf16 operands at native MXU rate, f32 accumulation.
    h = jnp.dot(x_ref[...], wt_ref[...], preferred_element_type=jnp.float32)
    h_ref[...] = h.astype(h_ref.dtype)
    # Attention logit: the 1-column MXU matmul is replaced by a VPU
    # broadcast-multiply + lane reduce (XLU), done on the f32 h for precision.
    logit = jnp.sum(h * wa_ref[...], axis=-1, keepdims=True)          # (bt, 1)
    a_ref[...] = _mish(logit).astype(a_ref.dtype)


# --------------------------------------------------------------------------
# Kernel 2: softmax-weighted scatter-sum as a single one-hot matmul
# --------------------------------------------------------------------------
def _aggregate_kernel(rows_ref, alpha_ref, h_ref, out_ref):
    t = pl.program_id(1)

    @pl.when(t == 0)
    def _():
        out_ref[...] = jnp.zeros_like(out_ref)

    te = out_ref.shape[0]
    bt = h_ref.shape[0]
    e_base = pl.program_id(0) * te
    ent_ids = e_base + lax.broadcasted_iota(jnp.int32, (te, bt), 0)   # (te, bt)
    # Fold the softmax weights directly into the one-hot scatter matrix:
    # onehot_alpha[e, t] = alpha[t] if rows[t] == e else 0.
    w_onehot = jnp.where(ent_ids == rows_ref[...], alpha_ref[...], 0.0)
    out_ref[...] += jnp.dot(w_onehot.astype(h_ref.dtype), h_ref[...],
                            preferred_element_type=jnp.float32)


# --------------------------------------------------------------------------
# Wrapper
# --------------------------------------------------------------------------
def kb_graph_attentional_head_forward(
    triple_features,            # (T, 2*Din + Drel) f32
    sparse_indices,             # (2, T) int32, destination row index = indices[0]
    triple_fc_weight,           # (Dout, 2*Din + Drel)  -- torch Linear layout
    attention_fc_weight,        # (1, Dout)             -- torch Linear layout
    num_entities,
):
    f32, bf16 = jnp.float32, jnp.bfloat16
    T, K = triple_features.shape
    Dout = triple_fc_weight.shape[0]

    # --- tile sizes ----------------------------------------------------------
    K_pad = _round_up(K, 128)
    D_pad = _round_up(Dout, 128)                 # lane-dense feature axis
    # Large triple tiles (mem-bound roofline); shrink if K is unusually wide.
    bt = min(512 if K_pad <= 2048 else 256, _round_up(T, 8))
    T_pad = _round_up(T, bt)

    # Entity tiling: 256-aligned for large E (matches the 256-wide MXU on
    # v6e/v7x); otherwise split into exactly two tiles so the "parallel" entity
    # axis can feed both v7x TensorCores while h is streamed at most twice.
    if num_entities > 512:
        te = 256
        E_pad = _round_up(num_entities, te)
    else:
        E_pad = max(16, _round_up(num_entities, 16))
        te = E_pad // 2

    # --- pad/cast inputs & weights (only when needed; zero padding is exact) --
    x = triple_features.astype(bf16)
    if (T_pad, K_pad) != (T, K):
        x = jnp.pad(x, ((0, T_pad - T), (0, K_pad - K)))
    wt = jnp.pad(triple_fc_weight.T.astype(bf16),
                 ((0, K_pad - K), (0, D_pad - Dout)))
    wa = jnp.pad(attention_fc_weight.astype(f32),
                 ((0, 0), (0, D_pad - Dout)))                  # (1, D_pad), f32

    cparams = dict(vmem_limit_bytes=32 * 1024 * 1024)          # explicit for v5e

    # --- kernel 1: h = X @ Wt (bf16),  a = mish(sum(h * wa, -1)) -------------
    h_pad, a_pad = pl.pallas_call(
        _fc_attn_kernel,
        out_shape=(
            jax.ShapeDtypeStruct((T_pad, D_pad), bf16),
            jax.ShapeDtypeStruct((T_pad, 1), f32),
        ),
        grid_spec=pltpu.PrefetchScalarGridSpec(
            num_scalar_prefetch=0,
            grid=(T_pad // bt,),
            in_specs=[
                pl.BlockSpec((bt, K_pad), lambda i: (i, 0)),
                pl.BlockSpec((K_pad, D_pad), lambda i: (0, 0)),   # resident, 1 DMA
                pl.BlockSpec((1, D_pad), lambda i: (0, 0)),
            ],
            out_specs=[
                pl.BlockSpec((bt, D_pad), lambda i: (i, 0)),
                pl.BlockSpec((bt, 1), lambda i: (i, 0)),
            ],
        ),
        compiler_params=pltpu.CompilerParams(
            dimension_semantics=("parallel",), **cparams),
    )(x, wt, wa)

    # --- tiny glue on a length-T vector: per-segment softmax weights ---------
    # Per-segment max (exactly what torch.sparse.softmax uses) avoids the
    # global-max underflow issue for segments far below the global maximum.
    a = a_pad[:T, 0]
    rows = sparse_indices[0].astype(jnp.int32)
    amax = jax.ops.segment_max(a, rows, num_segments=num_entities)
    w = jnp.exp(a - amax[rows])
    den = jax.ops.segment_sum(w, rows, num_segments=num_entities)
    alpha = w / den[rows]                                        # (T,)

    rows_pad = jnp.full((1, T_pad), -1, jnp.int32).at[0, :T].set(rows)
    alpha_pad = jnp.zeros((1, T_pad), f32).at[0, :T].set(alpha)

    # --- kernel 2: out = onehot_alpha @ h, accumulated over triple tiles -----
    out_pad = pl.pallas_call(
        _aggregate_kernel,
        out_shape=jax.ShapeDtypeStruct((E_pad, D_pad), f32),
        grid_spec=pltpu.PrefetchScalarGridSpec(
            num_scalar_prefetch=0,
            grid=(E_pad // te, T_pad // bt),
            in_specs=[
                pl.BlockSpec((1, bt), lambda e, t: (0, t)),
                pl.BlockSpec((1, bt), lambda e, t: (0, t)),
                pl.BlockSpec((bt, D_pad), lambda e, t: (t, 0)),
            ],
            out_specs=pl.BlockSpec((te, D_pad), lambda e, t: (e, 0)),
        ),
        compiler_params=pltpu.CompilerParams(
            dimension_semantics=("parallel", "arbitrary"), **cparams),
    )(rows_pad, alpha_pad, h_pad)

    return out_pad[:num_entities, :Dout]


# --------------------------------------------------------------------------
# Pure-JAX reference matching the PyTorch semantics (eval mode, unique pairs)
# --------------------------------------------------------------------------
def kb_graph_attentional_head_reference(
    triple_features, sparse_indices, triple_fc_weight, attention_fc_weight,
    num_entities,
):
    hp = jax.lax.Precision.HIGHEST
    h = jnp.dot(triple_features, triple_fc_weight.T, precision=hp)
    a = jnp.dot(h, attention_fc_weight.T, precision=hp)[:, 0]
    a = _mish(a)
    rows = sparse_indices[0]
    amax = jax.ops.segment_max(a, rows, num_segments=num_entities)
    w = jnp.exp(a - amax[rows])
    den = jax.ops.segment_sum(w, rows, num_segments=num_entities)
    alpha = w / den[rows]
    return jax.ops.segment_sum(
        h * alpha[:, None], rows, num_segments=num_entities)


if __name__ == "__main__":
    key = jax.random.PRNGKey(0)
    k1, k2, k3, k4 = jax.random.split(key, 4)

    d_in, d_out, d_rel = 16, 32, 16
    num_triples, num_entities, num_cols = 64, 12, 12
    k_dim = 2 * d_in + d_rel                       # 48

    triple_features = jax.random.normal(k1, (num_triples, k_dim), jnp.float32)
    triple_fc_weight = jax.random.normal(
        k2, (d_out, k_dim), jnp.float32) * (1.0 / jnp.sqrt(k_dim))
    attention_fc_weight = jax.random.normal(
        k3, (1, d_out), jnp.float32) * (1.0 / jnp.sqrt(d_out))

    # unique (row, col) adjacency pairs -> coalesce() is a pure sort.
    pair_ids = jax.random.choice(
        k4, num_entities * num_cols, (num_triples,), replace=False)
    rows = (pair_ids // num_cols).astype(jnp.int32)
    cols = (pair_ids % num_cols).astype(jnp.int32)
    sparse_indices = jnp.stack([rows, cols], axis=0)

    out = kb_graph_attentional_head_forward(
        triple_features, sparse_indices, triple_fc_weight,
        attention_fc_weight, num_entities)
    out = jax.block_until_ready(out)

    ref = kb_graph_attentional_head_reference(
        triple_features, sparse_indices, triple_fc_weight,
        attention_fc_weight, num_entities)

    assert out.shape == (num_entities, d_out), out.shape
    # Tolerance reflects bf16 MXU operands (per perf review) vs the f32 reference.
    assert jnp.allclose(out, ref, atol=2.5e-2, rtol=2.5e-2), float(
        jnp.max(jnp.abs(out - ref)))

    print("KERNEL_OK")
</pallas_src>

<mosaic_0001>
module attributes {stable_mosaic.version = 11 : i64} {
  func.func @_fc_attn_kernel(%arg0: i32, %arg1: memref<64x128xbf16, #tpu.memory_space<vmem>>, %arg2: memref<128x128xbf16, #tpu.memory_space<vmem>>, %arg3: memref<1x128xf32, #tpu.memory_space<vmem>>, %arg4: memref<64x128xbf16, #tpu.memory_space<vmem>>, %arg5: memref<64x1xf32, #tpu.memory_space<vmem>>) attributes {dimension_semantics = [#tpu.dimension_semantics<parallel>], iteration_bounds = array<i64: 1>, scalar_prefetch = 0 : i64, scratch_operands = 0 : i64, tpu.core_type = #tpu.core_type<tc>, window_params = [{transform_indices = @transform_0, window_bounds = array<i64: 64, 128>}, {pipeline_mode = #tpu.pipeline_mode<synchronous>, transform_indices = @transform_1, window_bounds = array<i64: 128, 128>}, {pipeline_mode = #tpu.pipeline_mode<synchronous>, transform_indices = @transform_2, window_bounds = array<i64: 1, 128>}, {transform_indices = @transform_3, window_bounds = array<i64: 64, 128>}, {transform_indices = @transform_4, window_bounds = array<i64: 64, 1>}]} {
    %c0 = arith.constant 0 : index
    %c0_0 = arith.constant 0 : index
    %0 = vector.load %arg1[%c0, %c0_0] : memref<64x128xbf16, #tpu.memory_space<vmem>>, vector<64x128xbf16>
    %c0_1 = arith.constant 0 : index
    %c0_2 = arith.constant 0 : index
    %1 = vector.load %arg2[%c0_1, %c0_2] : memref<128x128xbf16, #tpu.memory_space<vmem>>, vector<128x128xbf16>
    %cst = arith.constant dense<0.000000e+00> : vector<64x128xf32>
    %2 = tpu.matmul %0, %1, %cst {dimension_numbers = #tpu.dot_dimension_numbers<[1], [0], [0], [1], [0, 0, 1, 1], [], []>} : vector<64x128xbf16>, vector<128x128xbf16>, vector<64x128xf32> -> vector<64x128xf32>
    %3 = arith.truncf %2 : vector<64x128xf32> to vector<64x128xbf16>
    %c0_3 = arith.constant 0 : index
    %c0_4 = arith.constant 0 : index
    %4 = vector.load %arg4[%c0_3, %c0_4] : memref<64x128xbf16, #tpu.memory_space<vmem>>, vector<64x128xbf16>
    tpu.vector_store %arg4[%c0_3, %c0_4], %3 {strides = array<i32>} : memref<64x128xbf16, #tpu.memory_space<vmem>>, vector<64x128xbf16>,
    %c0_5 = arith.constant 0 : index
    %c0_6 = arith.constant 0 : index
    %5 = vector.load %arg3[%c0_5, %c0_6] : memref<1x128xf32, #tpu.memory_space<vmem>>, vector<1x128xf32>
    %6 = vector.broadcast %5 : vector<1x128xf32> to vector<64x128xf32>
    %7 = arith.mulf %2, %6 : vector<64x128xf32>
    %cst_7 = arith.constant dense<0.000000e+00> : vector<64xf32>
    %8 = vector.multi_reduction <add>, %7, %cst_7 [1] : vector<64x128xf32> to vector<64xf32>
    %9 = vector.shape_cast %8 : vector<64xf32> to vector<64x1xf32>
    %cst_8 = arith.constant 0.000000e+00 : f32
    %10 = vector.broadcast %cst_8 : f32 to vector<64x1xf32>
    %11 = arith.maximumf %9, %10 : vector<64x1xf32>
    %12 = math.absf %9 : vector<64x1xf32>
    %cst_9 = arith.constant 0.000000e+00 : f32
    %13 = vector.broadcast %cst_9 : f32 to vector<64x1xf32>
    %14 = arith.subf %13, %12 : vector<64x1xf32>
    %15 = math.exp %14 : vector<64x1xf32>
    %cst_10 = arith.constant 1.000000e+00 : f32
    %16 = vector.broadcast %cst_10 : f32 to vector<64x1xf32>
    %17 = arith.addf %16, %15 : vector<64x1xf32>
    %18 = math.log %17 : vector<64x1xf32>
    %19 = arith.addf %11, %18 : vector<64x1xf32>
    %20 = math.tanh %19 : vector<64x1xf32>
    %21 = arith.mulf %9, %20 : vector<64x1xf32>
    %c0_11 = arith.constant 0 : index
    %c0_12 = arith.constant 0 : index
    %22 = vector.load %arg5[%c0_11, %c0_12] : memref<64x1xf32, #tpu.memory_space<vmem>>, vector<64x1xf32>
    tpu.vector_store %arg5[%c0_11, %c0_12], %21 {strides = array<i32>} : memref<64x1xf32, #tpu.memory_space<vmem>>, vector<64x1xf32>,
    return
  }
  func.func @transform_0(%arg0: i32) -> (i32, i32) {
    %c0_i32 = arith.constant 0 : i32
    %c0_i32_0 = arith.constant 0 : i32
    return %arg0, %c0_i32 : i32, i32
  }
  func.func @transform_1(%arg0: i32) -> (i32, i32) {
    %c0_i32 = arith.constant 0 : i32
    %c0_i32_0 = arith.constant 0 : i32
    %c0_i32_1 = arith.constant 0 : i32
    return %c0_i32, %c0_i32_0 : i32, i32
  }
  func.func @transform_2(%arg0: i32) -> (i32, i32) {
    %c0_i32 = arith.constant 0 : i32
    %c0_i32_0 = arith.constant 0 : i32
    %c0_i32_1 = arith.constant 0 : i32
    return %c0_i32, %c0_i32_0 : i32, i32
  }
  func.func @transform_3(%arg0: i32) -> (i32, i32) {
    %c0_i32 = arith.constant 0 : i32
    %c0_i32_0 = arith.constant 0 : i32
    return %arg0, %c0_i32 : i32, i32
  }
  func.func @transform_4(%arg0: i32) -> (i32, i32) {
    %c0_i32 = arith.constant 0 : i32
    %c0_i32_0 = arith.constant 0 : i32
    return %arg0, %c0_i32 : i32, i32
  }
}

</mosaic_0001>

<bundles_post_ra>
// kernel: tpu_custom_call.1
= control target key start
LH: loop header
LB: loop body
LE: loop exit
PB: predicated region body
PF: predicated region fallthrough
CT: control target
= control target key end

     0   :  { %10 = vsyncpa [#allocation3], 0  ;;  %s701_s0 = inlined_call_operand.hbm [shape: bf16[64,128], index: 0, kind: input, shape index: {}]   ;;  %s702_s1 = inlined_call_operand.hbm [shape: bf16[128,128], index: 1, kind: input, shape index: {}]   ;;  %s703_s2 = inlined_call_operand.vmem [shape: f32[1,128], index: 2, kind: input, shape index: {}]   ;;  %s704_s3 = inlined_call_operand.hbm [shape: bf16[64,128], index: 3, kind: output, shape index: {0}]   ;;  %s705_s4 = inlined_call_operand.vmem [shape: f32[64,1], index: 4, kind: output, shape index: {1}]  }
   0x1   :  { %11 = vsyncpa [#allocation6], 0 }
   0x2   :  { %12 = vsyncpa [#allocation4], 0  ;;  %s17_s17 = sshll.u32 %s701_s0, 4  ;;  %s578_s18 = smov [#allocation2]   ;;  %s18_s17 = int_to_ptr.hbm [resolvable:$true] %s17_s17 }
   0x3   :  { %s19_s19 = sshll.u32 %s578_s18, 4  ;;  %s30_s22 = sshll.u32 %s702_s1, 4  ;;  %s20_s19 = int_to_ptr.vmem [resolvable:$true] %s19_s19  ;;  %s31_s22 = int_to_ptr.hbm [resolvable:$true] %s30_s22 }
   0x4   :  { %s579_s23 = smov 64   ;;  %s580_s24 = smov 4  }
   0x5   :  { %25 = dma.hbm_to_vmem [thread:$0]  %s18_s17, 512, %s20_s19, [#allocation3], %s579_s23, %s579_s23, %s580_s24  }
   0x6   :  { %s581_s25 = smov [#allocation5]  }
   0x7   :  { %s32_s26 = sshll.u32 %s581_s25, 4  ;;  %s33_s26 = int_to_ptr.vmem [resolvable:$true] %s32_s26 }
   0x8   :  { %38 = dma.hbm_to_vmem [thread:$0]  %s31_s22, 1024, %s33_s26, [#allocation6], %s579_s23, %s579_s23, %s580_s24  }
   0x9   :  { %572 = dma.done.wait [#allocation3], 512  }
   0xa   :  { %573 = vsyncadd [#allocation3], 4294966784 }
   0xb   :  { %574 = dma.done.wait [#allocation6], 1024  }
   0xc   :  { %575 = vsyncadd [#allocation6], 4294966272  ;;  %v398_v0 = vld [vmem:[#allocation5 + $0x38] sm:$0xff]  ;;  %v397_v1 = vld [vmem:[#allocation5 + $0x30] sm:$0xff]  ;;  %s321_s30 = sshll.u32 %s704_s3, 4  ;;  %vm306_vm0 = vcmask 7168   ;;  %s322_s30 = int_to_ptr.hbm [resolvable:$true] %s321_s30 }
   0xd   :  { %145 = vmatpush.bf16.msra.mxu0 %v398_v0  ;;  %422 = vmatpush.bf16.msra.mxu1 %v398_v0  ;;  %v396_v2 = vld [vmem:[#allocation5 + $0x28] sm:$0xff]  ;;  %v395_v3 = vld [vmem:[#allocation5 + $0x20] sm:$0xff]  ;;  %v394_v4 = vld [vmem:[#allocation5 + $0x18] sm:$0xff] }
   0xe   :  { %423 = vmatpush.bf16.msra.mxu2 %v398_v0  ;;  %424 = vmatpush.bf16.msra.mxu3 %v398_v0  ;;  %v393_v5 = vld [vmem:[#allocation5 + $0x10] sm:$0xff]  ;;  %v392_v6 = vld [vmem:[#allocation5 + $0x8] sm:$0xff]  ;;  %v391_v7 = vld [vmem:[#allocation5] sm:$0xff] }
   0xf   :  { %v387_v8 = vld [vmem:[#allocation2] sm:$0xff]  ;;  %v388_v9 = vld [vmem:[#allocation2 + $0x8] sm:$0xff]  ;;  %v389_v10 = vld [vmem:[#allocation2 + $0x10] sm:$0xff] }
  0x10   :  { %v390_v11 = vld [vmem:[#allocation2 + $0x18] sm:$0xff]  ;;  %v451_v12 = vld [vmem:[%s703_s2] ss:$0 sm:$0xff]  ;;  %s582_s2 = smov [#allocation7]  }
  0x11   :  { %146 = vmatpush.bf16.msra.mxu0 %v397_v1  ;;  %425 = vmatpush.bf16.msra.mxu1 %v397_v1  ;;  %s319_s27 = sshll.u32 %s582_s2, 4  ;;  %s320_s27 = int_to_ptr.vmem [resolvable:$true] %s319_s27 }
  0x12   :  { %426 = vmatpush.bf16.msra.mxu2 %v397_v1  ;;  %427 = vmatpush.bf16.msra.mxu3 %v397_v1 }
  0x15   :  { %147 = vmatpush.bf16.msra.mxu0 %v396_v2  ;;  %428 = vmatpush.bf16.msra.mxu1 %v396_v2 }
  0x16   :  { %429 = vmatpush.bf16.msra.mxu2 %v396_v2  ;;  %430 = vmatpush.bf16.msra.mxu3 %v396_v2 }
  0x19   :  { %148 = vmatpush.bf16.msra.mxu0 %v395_v3  ;;  %431 = vmatpush.bf16.msra.mxu1 %v395_v3 }
  0x1a   :  { %432 = vmatpush.bf16.msra.mxu2 %v395_v3  ;;  %433 = vmatpush.bf16.msra.mxu3 %v395_v3 }
  0x1d   :  { %149 = vmatpush.bf16.msra.mxu0 %v394_v4  ;;  %434 = vmatpush.bf16.msra.mxu1 %v394_v4 }
  0x1e   :  { %435 = vmatpush.bf16.msra.mxu2 %v394_v4  ;;  %436 = vmatpush.bf16.msra.mxu3 %v394_v4 }
  0x21   :  { %150 = vmatpush.bf16.msra.mxu0 %v393_v5  ;;  %437 = vmatpush.bf16.msra.mxu1 %v393_v5 }
  0x22   :  { %438 = vmatpush.bf16.msra.mxu2 %v393_v5  ;;  %439 = vmatpush.bf16.msra.mxu3 %v393_v5 }
  0x25   :  { %151 = vmatpush.bf16.msra.mxu0 %v392_v6  ;;  %440 = vmatpush.bf16.msra.mxu1 %v392_v6 }
  0x26   :  { %441 = vmatpush.bf16.msra.mxu2 %v392_v6  ;;  %442 = vmatpush.bf16.msra.mxu3 %v392_v6 }
  0x29   :  { %152 = vmatpush.bf16.msra.mxu0 %v391_v7  ;;  %443 = vmatpush.bf16.msra.mxu1 %v391_v7 }
  0x2a   :  { %444 = vmatpush.bf16.msra.mxu2 %v391_v7  ;;  %445 = vmatpush.bf16.msra.mxu3 %v391_v7 }
  0x2c   :  { %153 = vmatmul.bf16.vlgmr.msra.gmra.mxu0 %v387_v8  ;;  %158 = vmatmul.bf16.vlgmr.msra.gmra.mxu1 %v388_v9 }
  0x2d   :  { %163 = vmatmul.bf16.vlgmr.msra.gmra.mxu2 %v389_v10  ;;  %168 = vmatmul.bf16.vlgmr.msra.gmra.mxu3 %v390_v11 }
  0xa9   :  { %v154_v13 = vpop.f32.mrf.mxu0  ;;  %v159_v14 = vpop.f32.mrf.mxu1 }
  0xaa   :  { %v196_v15 = vmul.f32 %v451_v12, %v159_v14  ;;  %v194_v16 = vmul.f32 %v451_v12, %v154_v13 }
  0xac   :  { %206 = vadd.xlane.f32.xlu1 %v196_v15  ;;  %202 = vadd.xlane.f32.xlu0 %v194_v16 }
  0xb0   :  { %v164_v17 = vpop.f32.mrf.mxu2  ;;  %v169_v18 = vpop.f32.mrf.mxu3 }
  0xb1   :  { %v156_v19 = vpop.f32.mrf.mxu0  ;;  %v161_v20 = vpop.f32.mrf.mxu1  ;;  %v198_v21 = vmul.f32 %v451_v12, %v164_v17  ;;  %v200_v32 = vmul.f32 %v451_v12, %v169_v18 }
  0xb2   :  { %v402_v22 = vpack.c.bf16 %v156_v19, %v154_v13  ;;  %v195_v23 = vmul.f32 %v451_v12, %v156_v19  ;;  %v407_v24 = vpack.c.bf16 %v161_v20, %v159_v14  ;;  %v197_v25 = vmul.f32 %v451_v12, %v161_v20 }
  0xb3   :  { %210 = vadd.xlane.f32.xlu2 %v198_v21 }
  0xb4   :  { %403 = vst [vmem:[#allocation7] sm:$0xff] %v402_v22   ;;  %208 = vadd.xlane.f32.xlu1 %v197_v25  ;;  %204 = vadd.xlane.f32.xlu0 %v195_v23 }
  0xb5   :  { %419 = vst [vmem:[#allocation7 + $0x8] sm:$0xff] %v407_v24  }
  0xb8   :  { %v166_v26 = vpop.f32.mrf.mxu2  ;;  %v171_v27 = vpop.f32.mrf.mxu3 }
  0xb9   :  { %v412_v28 = vpack.c.bf16 %v166_v26, %v164_v17  ;;  %v199_v29 = vmul.f32 %v451_v12, %v166_v26  ;;  %v417_v30 = vpack.c.bf16 %v171_v27, %v169_v18  ;;  %v201_v31 = vmul.f32 %v451_v12, %v171_v27 }
  0xbb   :  { %420 = vst [vmem:[#allocation7 + $0x10] sm:$0xff] %v412_v28   ;;  %212 = vadd.xlane.f32.xlu2 %v199_v29 }
  0xbc   :  { %421 = vst [vmem:[#allocation7 + $0x18] sm:$0xff] %v417_v30   ;;  %216 = vadd.xlane.f32.xlu1 %v201_v31  ;;  %214 = vadd.xlane.f32.xlu0 %v200_v32 }
  0xbd   :  { %327 = dma.vmem_to_hbm [thread:$0]  %s320_s27, 512, %s322_s30, [#allocation4], %s579_s23, %s579_s23, %s580_s24  }
 0x11f   :  { %v629_v33 = vpop.xlane.xlu1 %206  ;;  %v631_v34 = vpop.xlane.xlu0 %202 }
 0x120   :  { %v228_v35 = vand.u32 2147483647, %v629_v33  ;;  %v226_v36 = vand.u32 2147483647, %v631_v34  ;;  %v220_v11 = vmax.f32 %v629_v33, 0.0  ;;  %v218_v14 = vmax.f32 %v631_v34, 0.0 }
 0x122   :  { %v236_v37 = vsub.f32 0.0, %v228_v35  ;;  %v234_v38 = vsub.f32 0.0, %v226_v36 }
 0x124   :  { %v246_v39 = vmul.f32 1.442695, %v236_v37  ;;  %v242_v40 = vmul.f32 1.442695, %v234_v38 }
 0x126   :  { %452 = vpow2.f32 %v246_v39  ;;  %v635_v41 = vpop.xlane.xlu2 %210 }
 0x127   :  { %454 = vpow2.f32 %v242_v40  ;;  %v230_v42 = vand.u32 2147483647, %v635_v41  ;;  %v638_v43 = vpop.xlane.xlu1 %208  ;;  %v640_v44 = vpop.xlane.xlu0 %204  ;;  %v222_v23 = vmax.f32 %v635_v41, 0.0 }
 0x128   :  { %v229_v45 = vand.u32 2147483647, %v638_v43  ;;  %v227_v46 = vand.u32 2147483647, %v640_v44  ;;  %v221_v26 = vmax.f32 %v638_v43, 0.0  ;;  %v219_v40 = vmax.f32 %v640_v44, 0.0 }
 0x129   :  { %v238_v47 = vsub.f32 0.0, %v230_v42 }
 0x12a   :  { %v237_v48 = vsub.f32 0.0, %v229_v45  ;;  %v235_v49 = vsub.f32 0.0, %v227_v46 }
 0x12b   :  { %v250_v50 = vmul.f32 1.442695, %v238_v47 }
 0x12c   :  { %v453_v51 = vpop.eup %452  ;;  %v248_v52 = vmul.f32 1.442695, %v237_v48  ;;  %v244_v55 = vmul.f32 1.442695, %v235_v49 }
 0x12d   :  { %v455_v53 = vpop.eup %454  ;;  %v260_v54 = vadd.f32 1.0, %v453_v51  ;;  %456 = vpow2.f32 %v250_v50 }
 0x12e   :  { %v258_v56 = vadd.f32 1.0, %v455_v53  ;;  %458 = vpow2.f32 %v248_v52  ;;  %v644_v57 = vpop.xlane.xlu2 %212 }
 0x12f   :  { %460 = vlog2.f32 %v260_v54  ;;  %v231_v58 = vand.u32 2147483647, %v644_v57  ;;  %v647_v59 = vpop.xlane.xlu1 %216  ;;  %v649_v60 = vpop.xlane.xlu0 %214 }
 0x130   :  { %462 = vlog2.f32 %v258_v56  ;;  %v233_v61 = vand.u32 2147483647, %v647_v59  ;;  %v232_v63 = vand.u32 2147483647, %v649_v60  ;;  %v225_v54 = vmax.f32 %v647_v59, 0.0 }
 0x131   :  { %464 = vpow2.f32 %v244_v55  ;;  %v239_v62 = vsub.f32 0.0, %v231_v58 }
 0x132   :  { %v241_v0 = vsub.f32 0.0, %v233_v61  ;;  %v240_v3 = vsub.f32 0.0, %v232_v63 }
 0x133   :  { %v457_v1 = vpop.eup %456  ;;  %v252_v2 = vmul.f32 1.442695, %v239_v62 }
 0x134   :  { %v459_v4 = vpop.eup %458  ;;  %v262_v5 = vadd.f32 1.0, %v457_v1  ;;  %v256_v6 = vmul.f32 1.442695, %v241_v0  ;;  %v254_v9 = vmul.f32 1.442695, %v240_v3 }
 0x135   :  { %v461_v7 = vpop.eup %460  ;;  %v261_v8 = vadd.f32 1.0, %v459_v4  ;;  %466 = vpow2.f32 %v252_v2 }
 0x136   :  { %v463_v10 = vpop.eup %462  ;;  %v271_v12 = vmul.f32 0.6931472, %v461_v7  ;;  %468 = vlog2.f32 %v262_v5 }
 0x137   :  { %v465_v13 = vpop.eup %464  ;;  %v267_v15 = vmul.f32 0.6931472, %v463_v10  ;;  %470 = vlog2.f32 %v261_v8 }
 0x138   :  { %v284_v16 = vadd.f32 %v271_v12, %v220_v11  ;;  %v259_v17 = vadd.f32 1.0, %v465_v13  ;;  %472 = vpow2.f32 %v256_v6 }
 0x139   :  { %v282_v18 = vadd.f32 %v267_v15, %v218_v14  ;;  %474 = vpow2.f32 %v254_v9 }
 0x13a   :  { %476 = vtanh.f32 %v284_v16 }
 0x13b   :  { %v467_v19 = vpop.eup %466  ;;  %478 = vtanh.f32 %v282_v18 }
 0x13c   :  { %v469_v20 = vpop.eup %468  ;;  %480 = vlog2.f32 %v259_v17  ;;  %v263_v21 = vadd.f32 1.0, %v467_v19 }
 0x13d   :  { %v471_v22 = vpop.eup %470  ;;  %v275_v24 = vmul.f32 0.6931472, %v469_v20 }
 0x13e   :  { %v473_v25 = vpop.eup %472  ;;  %v273_v27 = vmul.f32 0.6931472, %v471_v22  ;;  %482 = vlog2.f32 %v263_v21 }
 0x13f   :  { %v475_v28 = vpop.eup %474  ;;  %v286_v29 = vadd.f32 %v275_v24, %v222_v23  ;;  %v265_v30 = vadd.f32 1.0, %v473_v25 }
 0x140   :  { %v477_v31 = vpop.eup %476  ;;  %v285_v32 = vadd.f32 %v273_v27, %v221_v26  ;;  %v264_v35 = vadd.f32 1.0, %v475_v28 }
 0x141   :  { %v479_v36 = vpop.eup %478  ;;  %v300_v37 = vmul.f32 %v477_v31, %v629_v33  ;;  %484 = vtanh.f32 %v286_v29 }
 0x142   :  { %v481_v38 = vpop.eup %480  ;;  %v298_v39 = vmul.f32 %v479_v36, %v631_v34  ;;  %486 = vtanh.f32 %v285_v32  ;;  %v223_v34 = vmax.f32 %v644_v57, 0.0 }
 0x143   :  { %309 = vst.msk [vmem:[%s705_s4 + $0x10] sm:$0xff] %vm306_vm0, %v300_v37  ;;  %v269_v42 = vmul.f32 0.6931472, %v481_v38  ;;  %488 = vlog2.f32 %v265_v30 }
 0x144   :  { %v483_v45 = vpop.eup %482  ;;  %307 = vst.msk [vmem:[%s705_s4] sm:$0xff] %vm306_vm0, %v298_v39  ;;  %490 = vlog2.f32 %v264_v35 }
 0x145   :  { %v283_v33 = vadd.f32 %v269_v42, %v219_v40  ;;  %v277_v46 = vmul.f32 0.6931472, %v483_v45 }
 0x147   :  { %v485_v47 = vpop.eup %484  ;;  %492 = vtanh.f32 %v283_v33  ;;  %v287_v48 = vadd.f32 %v277_v46, %v223_v34 }
 0x148   :  { %v487_v49 = vpop.eup %486  ;;  %v302_v50 = vmul.f32 %v485_v47, %v635_v41  ;;  %v224_v41 = vmax.f32 %v649_v60, 0.0 }
 0x149   :  { %v489_v51 = vpop.eup %488  ;;  %v301_v52 = vmul.f32 %v487_v49, %v638_v43  ;;  %494 = vtanh.f32 %v287_v48 }
 0x14a   :  { %v491_v53 = vpop.eup %490  ;;  %311 = vst.msk [vmem:[%s705_s4 + $0x20] sm:$0xff] %vm306_vm0, %v302_v50  ;;  %v281_v55 = vmul.f32 0.6931472, %v489_v51 }
 0x14b   :  { %310 = vst.msk [vmem:[%s705_s4 + $0x18] sm:$0xff] %vm306_vm0, %v301_v52  ;;  %v279_v56 = vmul.f32 0.6931472, %v491_v53 }
 0x14c   :  { %v289_v58 = vadd.f32 %v281_v55, %v225_v54 }
 0x14d   :  { %v493_v43 = vpop.eup %492  ;;  %v288_v61 = vadd.f32 %v279_v56, %v224_v41 }
 0x14e   :  { %v299_v62 = vmul.f32 %v493_v43, %v640_v44  ;;  %496 = vtanh.f32 %v289_v58 }
 0x14f   :  { %v495_v63 = vpop.eup %494  ;;  %498 = vtanh.f32 %v288_v61 }
 0x150   :  { %308 = vst.msk [vmem:[%s705_s4 + $0x8] sm:$0xff] %vm306_vm0, %v299_v62  ;;  %v303_v0 = vmul.f32 %v495_v63, %v644_v57 }
 0x152   :  { %312 = vst.msk [vmem:[%s705_s4 + $0x28] sm:$0xff] %vm306_vm0, %v303_v0 }
 0x154   :  { %v497_v1 = vpop.eup %496 }
 0x155   :  { %v499_v2 = vpop.eup %498  ;;  %v305_v3 = vmul.f32 %v497_v1, %v647_v59 }
 0x156   :  { %v304_v44 = vmul.f32 %v499_v2, %v649_v60 }
 0x157   :  { %314 = vst.msk [vmem:[%s705_s4 + $0x38] sm:$0xff] %vm306_vm0, %v305_v3 }
 0x158   :  { %313 = vst.msk [vmem:[%s705_s4 + $0x30] sm:$0xff] %vm306_vm0, %v304_v44 }
 0x159   :  { %576 = dma.done.wait [#allocation4], 512  }
 0x15a   :  { %577 = vsyncadd [#allocation4], 4294966784 }
 0x15b   :  { %336 = vsyncpa [#allocation3], 1 }
 0x15c   :  { %337 = vsyncpa [#allocation6], 1 }
 0x15d   :  { %338 = vsyncpa [#allocation4], 1 }

</bundles_post_ra>
